<compile_context>
chip_gen: v7x
topology: tpu7x:2x2x1
jax: 0.10.0
libtpu: 0.0.40
codegen_flags: <defaults>
</compile_context>

<pallas_src>
import jax
import jax.numpy as jnp
from jax import lax
from jax.experimental import pallas as pl
from jax.experimental.pallas import tpu as pltpu

BN_EPS = 1e-5


# ----------------------------------------------------------------------------
# Kernel 1: layer 1  (x @ W1 -> BatchNorm1d (train-mode) -> ReLU), bf16 output
# ----------------------------------------------------------------------------
def layer1_kernel(x_ref, w1_ref, gamma_ref, beta_ref, h_ref):
    # bf16 x bf16 -> f32 accumulation on the MXU. x is DMA'd once (constant
    # block); the in-kernel cast is cheap VPU work overlapped with the MXU.
    x_bf = x_ref[...].astype(jnp.bfloat16)
    h = jnp.dot(x_bf, w1_ref[...], preferred_element_type=jnp.float32)  # (B, tk)

    # nn.Linear bias b1 omitted: it shifts h and its batch mean identically,
    # so it cancels exactly in the train-mode BatchNorm subtraction below.
    # Single-pass batch statistics (f32): var = E[h^2] - mean^2.
    inv_b = 1.0 / x_ref.shape[0]
    mean = jnp.sum(h, axis=0, keepdims=True) * inv_b                    # (1, tk)
    mean_sq = jnp.sum(h * h, axis=0, keepdims=True) * inv_b             # (1, tk)
    var = jnp.maximum(mean_sq - mean * mean, 0.0)                       # biased var

    hn = (h - mean) * lax.rsqrt(var + BN_EPS)                           # EUP rsqrt
    hn = hn * gamma_ref[...] + beta_ref[...]
    h_ref[...] = jnp.maximum(hn, 0.0).astype(jnp.bfloat16)              # ReLU -> bf16


# ----------------------------------------------------------------------------
# Kernel 2: layer 2  (H @ W2 + b2), accumulate directly into resident out block
# ----------------------------------------------------------------------------
def layer2_kernel(h_ref, w2_ref, b2_ref, out_ref):
    k = pl.program_id(1)

    @pl.when(k == 0)
    def _():
        out_ref[...] = jnp.zeros_like(out_ref)

    out_ref[...] += jnp.dot(h_ref[...], w2_ref[...],
                            preferred_element_type=jnp.float32)

    @pl.when(k == pl.num_programs(1) - 1)
    def _():
        out_ref[...] += b2_ref[...]


# ----------------------------------------------------------------------------
# Wrapper
# ----------------------------------------------------------------------------
def _vmem_limit(buffer_bytes):
    # Explicit scoped-VMEM request: actual buffers + headroom, floor at 32 MiB
    # (>= all generation defaults, << physical), cap safely under v7x's 64 MiB.
    return int(min(56 << 20, max(32 << 20, int(1.5 * buffer_bytes) + (4 << 20))))


def prediction_model(x, w1_t, gamma, beta, w2_t, b2, *, tk=256, tn=256):
    """Forward pass of PredictionModel.

    x: (B, Din) f32. w1_t: (Din, Dh) bf16/f32, w2_t: (Dh, Dout) bf16/f32
    (pre-cast to bf16 at the caller to avoid per-call casts).
    gamma/beta/b2: (1, Dh)/(1, Dh)/(1, Dout) f32.
    """
    B, d_input = x.shape
    d_hidden = w1_t.shape[1]
    d_output = w2_t.shape[1]
    tk = min(tk, d_hidden)
    tn = min(tn, d_output)
    assert d_hidden % tk == 0 and d_output % tn == 0, "tile sizes must divide dims"
    nk = d_hidden // tk
    nj = d_output // tn

    w1_bf = w1_t if w1_t.dtype == jnp.bfloat16 else w1_t.astype(jnp.bfloat16)
    w2_bf = w2_t if w2_t.dtype == jnp.bfloat16 else w2_t.astype(jnp.bfloat16)

    # ---------------- layer 1: H = ReLU(BN(x @ W1)) ----------------
    l1_buf_bytes = (B * d_input * 4                # x block (constant index, f32)
                    + 2 * d_input * tk * 2         # W1 tile, double-buffered
                    + 2 * 2 * tk * 4               # gamma/beta tiles
                    + 2 * B * tk * 2)              # H output tile
    l1_cost = pl.CostEstimate(
        flops=2 * B * d_input * d_hidden + 10 * B * d_hidden,
        transcendentals=d_hidden,
        bytes_accessed=(B * d_input * 4 + d_input * d_hidden * 2
                        + 2 * d_hidden * 4 + B * d_hidden * 2))

    h = pl.pallas_call(
        layer1_kernel,
        out_shape=jax.ShapeDtypeStruct((B, d_hidden), jnp.bfloat16),
        grid_spec=pltpu.PrefetchScalarGridSpec(
            num_scalar_prefetch=0,
            grid=(nk,),
            in_specs=[
                pl.BlockSpec((B, d_input), lambda k: (0, 0)),   # x (DMA'd once)
                pl.BlockSpec((d_input, tk), lambda k: (0, k)),  # W1 column tile
                pl.BlockSpec((1, tk), lambda k: (0, k)),        # gamma tile
                pl.BlockSpec((1, tk), lambda k: (0, k)),        # beta tile
            ],
            out_specs=pl.BlockSpec((B, tk), lambda k: (0, k)),
        ),
        compiler_params=pltpu.CompilerParams(
            dimension_semantics=("parallel",),
            vmem_limit_bytes=_vmem_limit(l1_buf_bytes),
        ),
        cost_estimate=l1_cost,
    )(x, w1_bf, gamma, beta)

    # ---------------- layer 2: out = H @ W2 + b2 ----------------
    l2_buf_bytes = (2 * B * tk * 2                 # H tile
                    + 2 * tk * tn * 2              # W2 tile
                    + 2 * tn * 4                   # b2 tile
                    + 2 * B * tn * 4)              # out block (f32 accumulator)
    l2_cost = pl.CostEstimate(
        flops=2 * B * d_hidden * d_output,
        transcendentals=0,
        bytes_accessed=(B * d_hidden * 2 + d_hidden * d_output * 2
                        + d_output * 4 + B * d_output * 4))

    out = pl.pallas_call(
        layer2_kernel,
        out_shape=jax.ShapeDtypeStruct((B, d_output), jnp.float32),
        grid_spec=pltpu.PrefetchScalarGridSpec(
            num_scalar_prefetch=0,
            grid=(nj, nk),                                          # k (reduction) last
            in_specs=[
                pl.BlockSpec((B, tk), lambda j, k: (0, k)),         # H tile
                pl.BlockSpec((tk, tn), lambda j, k: (k, j)),        # W2 tile
                pl.BlockSpec((1, tn), lambda j, k: (0, j)),         # b2 tile
            ],
            out_specs=pl.BlockSpec((B, tn), lambda j, k: (0, j)),   # resident acc
        ),
        compiler_params=pltpu.CompilerParams(
            dimension_semantics=("parallel", "arbitrary"),
            vmem_limit_bytes=_vmem_limit(l2_buf_bytes),
        ),
        cost_estimate=l2_cost,
    )(h, w2_bf, b2)

    return out


# ----------------------------------------------------------------------------
# Pure-JAX reference mirroring the kernel numerics (bf16 matmul operands)
# ----------------------------------------------------------------------------
def reference(x, w1_t, gamma, beta, w2_t, b2):
    h = jnp.dot(x.astype(jnp.bfloat16), w1_t.astype(jnp.bfloat16),
                preferred_element_type=jnp.float32)
    mean = h.mean(axis=0, keepdims=True)
    var = ((h - mean) ** 2).mean(axis=0, keepdims=True)
    h = (h - mean) * lax.rsqrt(var + BN_EPS) * gamma + beta
    h = jnp.maximum(h, 0.0)
    return jnp.dot(h.astype(jnp.bfloat16), w2_t.astype(jnp.bfloat16),
                   preferred_element_type=jnp.float32) + b2


if __name__ == "__main__":
    # Small shapes consistent with the module (scaled down from 2048/512/2048),
    # chosen so both kernels exercise multiple grid tiles (nk=2, nj=2 at 256 tiles).
    B, d_input, d_hidden, d_output = 64, 256, 512, 512

    key = jax.random.PRNGKey(0)
    kx, kw1, kw2, kb2 = jax.random.split(key, 4)

    x = jax.random.normal(kx, (B, d_input), dtype=jnp.float32)

    # Deterministic synthetic parameter init (uniform, roughly PyTorch-scale).
    bound1 = 1.0 / (d_input ** 0.5)
    w1_t = jax.random.uniform(kw1, (d_input, d_hidden), jnp.float32, -bound1, bound1)
    # Linear-1 bias intentionally omitted: cancels against train-mode BatchNorm.
    # TODO(synk): if the model is ever run in eval mode (running stats), b1 must
    # be added back and running_mean/running_var used instead of batch stats.

    gamma = jnp.ones((1, d_hidden), jnp.float32)   # BatchNorm1d weight init
    beta = jnp.zeros((1, d_hidden), jnp.float32)   # BatchNorm1d bias init

    bound2 = 1.0 / (d_hidden ** 0.5)
    w2_t = jax.random.uniform(kw2, (d_hidden, d_output), jnp.float32, -bound2, bound2)
    b2 = jax.random.uniform(kb2, (1, d_output), jnp.float32, -bound2, bound2)

    # Pre-cast static weights to bf16 once (not per call inside the wrapper).
    w1_bf = w1_t.astype(jnp.bfloat16)
    w2_bf = w2_t.astype(jnp.bfloat16)

    out = prediction_model(x, w1_bf, gamma, beta, w2_bf, b2)
    out = jax.block_until_ready(out)

    ref = reference(x, w1_t, gamma, beta, w2_t, b2)
    assert out.shape == (B, d_output)
    assert jnp.allclose(out, ref, atol=2e-3, rtol=2e-3), "mismatch vs reference"

    # TODO(synk): PyTorch BatchNorm1d in train mode also updates
    # running_mean/running_var as a side effect; those buffers are not emitted.

    print("KERNEL_OK")
</pallas_src>

<mosaic_0001>
module attributes {stable_mosaic.version = 11 : i64} {
  func.func @layer1_kernel(%arg0: i32, %arg1: memref<64x256xf32, #tpu.memory_space<vmem>>, %arg2: memref<256x256xbf16, #tpu.memory_space<vmem>>, %arg3: memref<1x256xf32, #tpu.memory_space<vmem>>, %arg4: memref<1x256xf32, #tpu.memory_space<vmem>>, %arg5: memref<64x256xbf16, #tpu.memory_space<vmem>>) attributes {dimension_semantics = [#tpu.dimension_semantics<parallel>], iteration_bounds = array<i64: 2>, scalar_prefetch = 0 : i64, scratch_operands = 0 : i64, tpu.core_type = #tpu.core_type<tc>, window_params = [{pipeline_mode = #tpu.pipeline_mode<synchronous>, transform_indices = @transform_0, window_bounds = array<i64: 64, 256>}, {transform_indices = @transform_1, window_bounds = array<i64: 256, 256>}, {transform_indices = @transform_2, window_bounds = array<i64: 1, 256>}, {transform_indices = @transform_3, window_bounds = array<i64: 1, 256>}, {transform_indices = @transform_4, window_bounds = array<i64: 64, 256>}]} {
    %c0 = arith.constant 0 : index
    %c0_0 = arith.constant 0 : index
    %0 = vector.load %arg1[%c0, %c0_0] : memref<64x256xf32, #tpu.memory_space<vmem>>, vector<64x256xf32>
    %1 = arith.truncf %0 : vector<64x256xf32> to vector<64x256xbf16>
    %c0_1 = arith.constant 0 : index
    %c0_2 = arith.constant 0 : index
    %2 = vector.load %arg2[%c0_1, %c0_2] : memref<256x256xbf16, #tpu.memory_space<vmem>>, vector<256x256xbf16>
    %cst = arith.constant dense<0.000000e+00> : vector<64x256xf32>
    %3 = tpu.matmul %1, %2, %cst {dimension_numbers = #tpu.dot_dimension_numbers<[1], [0], [0], [1], [0, 0, 1, 1], [], []>} : vector<64x256xbf16>, vector<256x256xbf16>, vector<64x256xf32> -> vector<64x256xf32>
    %cst_3 = arith.constant dense<0.000000e+00> : vector<256xf32>
    %4 = vector.multi_reduction <add>, %3, %cst_3 [0] : vector<64x256xf32> to vector<256xf32>
    %5 = vector.shape_cast %4 : vector<256xf32> to vector<1x256xf32>
    %cst_4 = arith.constant 1.562500e-02 : f32
    %6 = vector.broadcast %cst_4 : f32 to vector<1x256xf32>
    %7 = arith.mulf %5, %6 : vector<1x256xf32>
    %8 = arith.mulf %3, %3 : vector<64x256xf32>
    %cst_5 = arith.constant dense<0.000000e+00> : vector<256xf32>
    %9 = vector.multi_reduction <add>, %8, %cst_5 [0] : vector<64x256xf32> to vector<256xf32>
    %10 = vector.shape_cast %9 : vector<256xf32> to vector<1x256xf32>
    %cst_6 = arith.constant 1.562500e-02 : f32
    %11 = vector.broadcast %cst_6 : f32 to vector<1x256xf32>
    %12 = arith.mulf %10, %11 : vector<1x256xf32>
    %13 = arith.mulf %7, %7 : vector<1x256xf32>
    %14 = arith.subf %12, %13 : vector<1x256xf32>
    %cst_7 = arith.constant 0.000000e+00 : f32
    %15 = vector.broadcast %cst_7 : f32 to vector<1x256xf32>
    %16 = arith.maximumf %14, %15 : vector<1x256xf32>
    %17 = vector.broadcast %7 : vector<1x256xf32> to vector<64x256xf32>
    %18 = arith.subf %3, %17 : vector<64x256xf32>
    %cst_8 = arith.constant 9.99999974E-6 : f32
    %19 = vector.broadcast %cst_8 : f32 to vector<1x256xf32>
    %20 = arith.addf %16, %19 : vector<1x256xf32>
    %21 = math.rsqrt %20 : vector<1x256xf32>
    %22 = vector.broadcast %21 : vector<1x256xf32> to vector<64x256xf32>
    %23 = arith.mulf %18, %22 : vector<64x256xf32>
    %c0_9 = arith.constant 0 : index
    %c0_10 = arith.constant 0 : index
    %24 = vector.load %arg3[%c0_9, %c0_10] : memref<1x256xf32, #tpu.memory_space<vmem>>, vector<1x256xf32>
    %25 = vector.broadcast %24 : vector<1x256xf32> to vector<64x256xf32>
    %26 = arith.mulf %23, %25 : vector<64x256xf32>
    %c0_11 = arith.constant 0 : index
    %c0_12 = arith.constant 0 : index
    %27 = vector.load %arg4[%c0_11, %c0_12] : memref<1x256xf32, #tpu.memory_space<vmem>>, vector<1x256xf32>
    %28 = vector.broadcast %27 : vector<1x256xf32> to vector<64x256xf32>
    %29 = arith.addf %26, %28 : vector<64x256xf32>
    %cst_13 = arith.constant 0.000000e+00 : f32
    %30 = vector.broadcast %cst_13 : f32 to vector<64x256xf32>
    %31 = arith.maximumf %29, %30 : vector<64x256xf32>
    %32 = arith.truncf %31 : vector<64x256xf32> to vector<64x256xbf16>
    %c0_14 = arith.constant 0 : index
    %c0_15 = arith.constant 0 : index
    %33 = vector.load %arg5[%c0_14, %c0_15] : memref<64x256xbf16, #tpu.memory_space<vmem>>, vector<64x256xbf16>
    tpu.vector_store %arg5[%c0_14, %c0_15], %32 {strides = array<i32>} : memref<64x256xbf16, #tpu.memory_space<vmem>>, vector<64x256xbf16>,
    return
  }
  func.func @transform_0(%arg0: i32) -> (i32, i32) {
    %c0_i32 = arith.constant 0 : i32
    %c0_i32_0 = arith.constant 0 : i32
    %c0_i32_1 = arith.constant 0 : i32
    return %c0_i32, %c0_i32_0 : i32, i32
  }
  func.func @transform_1(%arg0: i32) -> (i32, i32) {
    %c0_i32 = arith.constant 0 : i32
    %c0_i32_0 = arith.constant 0 : i32
    return %c0_i32, %arg0 : i32, i32
  }
  func.func @transform_2(%arg0: i32) -> (i32, i32) {
    %c0_i32 = arith.constant 0 : i32
    %c0_i32_0 = arith.constant 0 : i32
    return %c0_i32, %arg0 : i32, i32
  }
  func.func @transform_3(%arg0: i32) -> (i32, i32) {
    %c0_i32 = arith.constant 0 : i32
    %c0_i32_0 = arith.constant 0 : i32
    return %c0_i32, %arg0 : i32, i32
  }
  func.func @transform_4(%arg0: i32) -> (i32, i32) {
    %c0_i32 = arith.constant 0 : i32
    %c0_i32_0 = arith.constant 0 : i32
    return %c0_i32, %arg0 : i32, i32
  }
}

</mosaic_0001>

<bundles_post_ra>
// kernel: tpu_custom_call.1
= control target key start
LH: loop header
LB: loop body
LE: loop exit
PB: predicated region body
PF: predicated region fallthrough
CT: control target
= control target key end

     0   :  { %9 = vsyncpa [#allocation3], 0  ;;  %s1679_s0 = inlined_call_operand.hbm [shape: f32[64,256], index: 0, kind: input, shape index: {}]   ;;  %s1680_s1 = inlined_call_operand.hbm [shape: bf16[256,512], index: 1, kind: input, shape index: {}]   ;;  %s1681_s2 = inlined_call_operand.vmem [shape: f32[1,512], index: 2, kind: input, shape index: {}]   ;;  %s1682_s3 = inlined_call_operand.vmem [shape: f32[1,512], index: 3, kind: input, shape index: {}]   ;;  %s1683_s4 = inlined_call_operand.hbm [shape: bf16[64,512], index: 4, kind: output, shape index: {}]  }
   0x1   :  { %10 = vsyncpa [#allocation6], 0 }
   0x2   :  { %12 = vsyncpa [#allocation6 + $0x1], 0 }
   0x3   :  { %13 = vsyncpa [#allocation4], 0 }
   0x4   :  { %15 = vsyncpa [#allocation4 + $0x1], 0  ;;  %s1300_s15 = smov 0   ;;  %s1302_s16 = smov 0  }
   0x5   :  { %s1304_s17 = smov 0   ;;  %s1306_s18 = smov 0  }
   0x6 LB: > { %s1321_s19 = sadd.s32 4294967295, %s1263_s18   ;;  %s919_s20 = sadd.s32 4294967294, %s1263_s18   ;;  %s1263_s18 = sphi %s1306_s18, %s1708_s18   ;;  %s1259_s17 = sphi %s1304_s17, %s1707_s17   ;;  %s1255_s16 = sphi %s1302_s16, %s1706_s16   ;;  %s1251_s15 = sphi %s1300_s15, %s1705_s15  }
   0x7   : > { %s1325_s21 = sadd.s32 1, %s1263_s18   ;;  %s49_s22 = sadd.s32 1, %s1259_s17 }
   0x8   : > { %s46_s23 = ssub.s32 %s1263_s18, %s1325_s21  ;;  %p56_p0 = scmp.ne.s32.totalorder %s1259_s17, %s1255_s16 }
   0x9   : > { %p47_p1 = scmp.eq.s32.totalorder %s46_s23, 0  ;;  %p57_p2 = scmp.eq.s32.totalorder %s1263_s18, 0 }
   0xa   : > { %p62_p3 = scmp.ne.s32.totalorder %s1255_s16, %s1251_s15  ;;  %p1684_p4 = scmp.eq.s32.totalorder %s1321_s19, 0 }
   0xb   : > { %s1337_s24 = scalar_select %p47_p1, %s1259_s17, %s49_s22  }
   0xc   : > { %p1339_p5 = por %p57_p2, %p56_p0  ;;  %p1345_p6 = por %p1684_p4, %p62_p3 }
   0xd   : > { %p138_p7 = scmp.eq.s32.totalorder %s1321_s19, 1  ;;  %p144_p8 = scmp.eq.s32.totalorder %s919_s20, 1 }
   0xe   : > { %s1688_s25 = scalar_select %p1339_p5, 1, 0 }
   0xf   : > { %s1689_s26 = scalar_select %p1345_p6, 1, 0 }
  0x10   : > { %p920_p9 = scmp.ge.s32.totalorder %s1263_s18, 1  ;;  %p151_p10 = scmp.lt.s32.totalorder %s1263_s18, 3 }
  0x11   : > { %p1352_p11 = por %p138_p7, %p56_p0  ;;  %p1356_p12 = por %p144_p8, %p62_p3 }
  0x12   : > { %p1360_p13 = pnand %p920_p9, %p151_p10  ;;  %s1265_s30 = smov [#allocation2]  }
  0x13   : > { %s1690_s27 = scalar_select %p1352_p11, 1, 0 }
  0x14   : > { %s1691_s28 = scalar_select %p1356_p12, 1, 0 }
  0x15   : > { %s1692_s29 = scalar_select %p1360_p13, 1, 0 }
  0x16   : > { %p1027_p1 = pneg %p1360_p13  ;;  %s163_s5 = sshll.u32 %s1265_s30, 4  ;;  %s164_s5 = int_to_ptr.vmem [resolvable:$true] %s163_s5 }
  0x17   : > { %s177_s7 = sand.u32 1, %s1259_s17   ;;  %s1135_s10 = scalar_lea.hbm %s1679_s0, 2048 }
  0x18   : > { %p1368_p2 = pnand %p1027_p1, %p1684_p4  ;;  %p1136_p7 = scmp.ne.s32.totalorder %s1679_s0, %s1135_s10 }
  0x19   : > { %p1142_p1 = scmp.lt.u32.totalorder %s1135_s10, %s1679_s0 }
  0x1a   : > { %p1137_p8 = pneg %p1368_p2 }
  0x1c   : > { %p1138_p9 = pnand %p1137_p8, %p1136_p7 }
  0x1e   : > { %p1139_p10 = pneg %p1138_p9 }
  0x20   : > { %p1144_p4 = pnand %p1142_p1, %p1139_p10 }
  0x22   : > { %1147 = shalt.err (!%p1144_p4)
}
  0x23   : > { %s1148_s20 = scalar_lea.vmem %s164_s5, 2048  ;;  %p1156_p11 = scmp.lt.s32.totalorder %s164_s5, %s164_s5 }
  0x24   : > { %p1149_p0 = scmp.ne.s32.totalorder %s164_s5, %s1148_s20  ;;  %p1157_p6 = scmp.lt.s32.totalorder %s1148_s20, %s1148_s20 }
  0x26   : > { %p1151_p3 = pnand %p1149_p0, %p1137_p8  ;;  %p1158_p13 = por %p1157_p6, %p1156_p11 }
  0x28   : > { %p1152_p12 = pneg %p1151_p3 }
  0x2a   : > { %p1159_p5 = pnand %p1158_p13, %p1152_p12 }
  0x2c   : > { %1162 = shalt.err (!%p1159_p5)
}
  0x2d   : > { %s1266_s22 = smov 256   ;;  %s1267_s23 = smov 16  }
  0x2e   : > { %1030 = dma.hbm_to_vmem [thread:$0]  (!%p1368_p2), %s1679_s0, 2048, %s164_s5, [#allocation3], %s1266_s22, %s1266_s22, %s1267_s23  }
  0x2f   : > { %p1694_p4 = scmp.ne.s32.totalorder %s1688_s25, 0  ;;  %p1695_p0 = scmp.lt.s32.totalorder %s1263_s18, 2 }
  0x30   : > { %s923_s10 = sshll.u32 %s177_s7, 8  ;;  %s977_s11 = sshll.u32 %s1263_s18, 7 }
  0x31   : > { %p1397_p3 = pnand %p1695_p0, %p1694_p4  ;;  %s1405_s6 = scalar_lea.hbm %s1680_s1, %s977_s11 }
  0x32   : > { %s181_s5 = scalar_lea.vmem [#allocation5], %s923_s10  ;;  %s1409_s14 = scalar_lea.sflag [#allocation6], %s177_s7 }
  0x33   : > { %s188_s25 = sshll.u32 %s181_s5, 4  ;;  %s1163_s20 = scalar_lea.hbm %s1405_s6, 4096  ;;  %s1407_s25 = int_to_ptr.vmem [resolvable:$true] %s188_s25 }
  0x34   : > { %p1164_p5 = scmp.ne.s32.totalorder %s1405_s6, %s1163_s20  ;;  %p1165_p6 = pneg %p1397_p3 }
  0x35   : > { %s1168_s8 = scalar_lea.hbm %s1680_s1, 8192  ;;  %p1169_p13 = scmp.lt.u32.totalorder %s1405_s6, %s1680_s1 }
  0x36   : > { %p1166_p11 = pnand %p1165_p6, %p1164_p5  ;;  %p1170_p2 = scmp.lt.u32.totalorder %s1168_s8, %s1163_s20 }
  0x37   : > { %p1172_p8 = scmp.lt.u32.totalorder %s1163_s20, %s1405_s6 }
  0x38   : > { %p1167_p12 = pneg %p1166_p11  ;;  %p1171_p7 = por %p1170_p2, %p1169_p13 }
  0x3a   : > { %p1173_p9 = por %p1172_p8, %p1171_p7 }
  0x3c   : > { %p1174_p10 = pnand %p1173_p9, %p1167_p12 }
  0x3e   : > { %1177 = shalt.err (!%p1174_p10)
}
  0x3f   : > { %s1178_s7 = scalar_lea.vmem %s1407_s25, 4096  ;;  %s1268_s10 = smov [#allocation5]  }
  0x40   : > { %p1179_p1 = scmp.ne.s32.totalorder %s1407_s25, %s1178_s7  ;;  %s1183_s13 = sshll.u32 %s1268_s10, 4  ;;  %s1184_s13 = int_to_ptr.vmem [resolvable:$false] %s1183_s13 }
  0x41   : > { %s1185_s5 = scalar_lea.vmem %s1184_s13, 8192  ;;  %p1186_p5 = scmp.lt.s32.totalorder %s1407_s25, %s1184_s13 }
  0x42   : > { %p1181_p4 = pnand %p1179_p1, %p1165_p6  ;;  %p1187_p11 = scmp.lt.s32.totalorder %s1185_s5, %s1178_s7 }
  0x44   : > { %p1182_p0 = pneg %p1181_p4  ;;  %p1188_p13 = por %p1187_p11, %p1186_p5 }
  0x46   : > { %p1189_p2 = pnand %p1188_p13, %p1182_p0 }
  0x48   : > { %1192 = shalt.err (!%p1189_p2)
}
  0x49   : > { %s1269_s20 = smov 128   ;;  %s1270_s23 = smov 8  }
  0x4a   : > { %1034 = dma.hbm_to_vmem [thread:$0]  (!%p1397_p3), %s1405_s6, 4096, %s1407_s25, %s1409_s14, %s1266_s22, %s1269_s20, %s1270_s23  }
  0x4b   : > { %p1697_p6 = scmp.ne.s32.totalorder %s1692_s29, 0 }
  0x4c   : > { %p1698_p12 = scmp.eq.s32.totalorder (!%p1697_p6), %s1321_s19, 0 }
  0x4d   : > { %216 = sbr.rel (%p1697_p6) target bundleno = 456 (0x1c8), region = 36 }
  0x54   : > { %1238 = dma.done.wait (%p1698_p12), [#allocation3], 2048   ;;  %p1699_p7 = pmov %p1698_p12 }
  0x55   : > { %s1445_s30 = sand.u32 1, %s1255_s16   ;;  %p1700_p3 = scmp.ne.s32.totalorder %s1689_s26, 0 }
  0x56   : > { %1240 = vsyncadd (%p1699_p7), [#allocation3], 4294965248  ;;  %s928_s8 = sshll.u32 %s1445_s30, 8  ;;  %s223_s11 = scalar_lea.sflag [#allocation6], %s1445_s30 }
  0x57   : > { %s1449_s9 = scalar_lea.vmem [#allocation5], %s928_s8 }
  0x58   : > { %1242 = dma.done.wait (%p1700_p3), %s223_s11, 4096  }
  0x59   : > { %1244 = vsyncadd (%p1700_p3), %s223_s11, 4294963200  ;;  %v1083_v0 = vld [vmem:[%s1449_s9 + $0x4] ss:$8 sps:$4 sm:$0xff]   ;;  %v1085_v1 = vld [vmem:[%s1449_s9] ss:$8 sps:$4 sm:$0xff]   ;;  %s930_s26 = sshll.u32 %s1321_s19, 1 }
  0x5a   : > { %487 = vmatprep.subr.bf16.mxu0 %v1083_v0  ;;  %v1086_v2 = vld [vmem:[%s1449_s9 + $0x14] ss:$8 sps:$4 sm:$0xff]   ;;  %987 = vmatprep.subr.bf16.mxu1 %v1083_v0  ;;  %v1088_v3 = vld [vmem:[%s1449_s9 + $0x10] ss:$8 sps:$4 sm:$0xff]   ;;  %v1089_v4 = vld [vmem:[%s1449_s9 + $0x24] ss:$8 sps:$4 sm:$0xff]  }
  0x5b   : > { %488 = vmatpush1.bf16.msra.mxu0 %v1085_v1  ;;  %1003 = vmatpush1.bf16.msra.mxu1 %v1085_v1  ;;  %v1091_v5 = vld [vmem:[%s1449_s9 + $0x20] ss:$8 sps:$4 sm:$0xff]   ;;  %v1092_v6 = vld [vmem:[%s1449_s9 + $0x34] ss:$8 sps:$4 sm:$0xff]   ;;  %v1094_v7 = vld [vmem:[%s1449_s9 + $0x30] ss:$8 sps:$4 sm:$0xff]  }
  0x5c   : > { %489 = vmatprep.subr.bf16.mxu0 %v1086_v2  ;;  %988 = vmatprep.subr.bf16.mxu1 %v1086_v2  ;;  %v1095_v8 = vld [vmem:[%s1449_s9 + $0x44] ss:$8 sps:$4 sm:$0xff]   ;;  %v1097_v9 = vld [vmem:[%s1449_s9 + $0x40] ss:$8 sps:$4 sm:$0xff]   ;;  %v1098_v10 = vld [vmem:[%s1449_s9 + $0x54] ss:$8 sps:$4 sm:$0xff]  }
  0x5d   : > { %v1100_v11 = vld [vmem:[%s1449_s9 + $0x50] ss:$8 sps:$4 sm:$0xff]   ;;  %v1101_v12 = vld [vmem:[%s1449_s9 + $0x64] ss:$8 sps:$4 sm:$0xff]   ;;  %v1103_v17 = vld [vmem:[%s1449_s9 + $0x60] ss:$8 sps:$4 sm:$0xff]  }
  0x5e   : > { %v272_v13 = vld [vmem:[#allocation2 + $0x8] sm:$0xff]  ;;  %v274_v14 = vld [vmem:[#allocation2 + $0x18] sm:$0xff]  ;;  %v271_v38 = vld [vmem:[#allocation2] sm:$0xff]  ;;  %p1578_p8 = scmp.lt.s32.totalorder %s930_s26, 3  ;;  %s929_s10 = sshll.u32 %s1445_s30, 6 }
  0x5f   : > { %490 = vmatpush1.bf16.msra.mxu0 %v1088_v3  ;;  %1004 = vmatpush1.bf16.msra.mxu1 %v1088_v3  ;;  %v288_v15 = vpack.c.bf16 %v274_v14, %v272_v13  ;;  %v280_v16 = vld [vmem:[#allocation2 + $0x48] sm:$0xff]  ;;  %v282_v18 = vld [vmem:[#allocation2 + $0x58] sm:$0xff]  ;;  %v273_v39 = vld [vmem:[#allocation2 + $0x10] sm:$0xff]  ;;  %s1618_s13 = scalar_lea.vmem [#allocation7], %s929_s10  ;;  %s986_s20 = sshll.u32 %s1321_s19, 7 }
  0x60   : > { %491 = vmatprep.subr.bf16.mxu0 %v1089_v4  ;;  %989 = vmatprep.subr.bf16.mxu1 %v1089_v4  ;;  %v1104_v19 = vld [vmem:[%s1449_s9 + $0x74] ss:$8 sps:$4 sm:$0xff]   ;;  %v292_v20 = vpack.c.bf16 %v282_v18, %v280_v16  ;;  %v1106_v21 = vld [vmem:[%s1449_s9 + $0x70] ss:$8 sps:$4 sm:$0xff]   ;;  %v1107_v22 = vld [vmem:[%s1449_s9 + $0x84] ss:$8 sps:$4 sm:$0xff]   ;;  %v287_v46 = vpack.c.bf16 %v273_v39, %v271_v38  ;;  %s1627_s8 = scalar_lea.hbm %s1683_s4, %s986_s20 }
  0x61   : > { %519 = vmatprep.mubr.bf16.mxu0 %v288_v15  ;;  %v1109_v23 = vld [vmem:[%s1449_s9 + $0x80] ss:$8 sps:$4 sm:$0xff]   ;;  %v1110_v24 = vld [vmem:[%s1449_s9 + $0x94] ss:$8 sps:$4 sm:$0xff]   ;;  %v1112_v25 = vld [vmem:[%s1449_s9 + $0x90] ss:$8 sps:$4 sm:$0xff]  }
  0x62   : > { %539 = vmatprep.mubr.bf16.mxu1 %v292_v20  ;;  %v1113_v26 = vld [vmem:[%s1449_s9 + $0xa4] ss:$8 sps:$4 sm:$0xff]   ;;  %v1115_v27 = vld [vmem:[%s1449_s9 + $0xa0] ss:$8 sps:$4 sm:$0xff]   ;;  %v1116_v28 = vld [vmem:[%s1449_s9 + $0xb4] ss:$8 sps:$4 sm:$0xff]  }
  0x63   : > { %492 = vmatpush1.bf16.msra.mxu0 %v1091_v5  ;;  %1005 = vmatpush1.bf16.msra.mxu1 %v1091_v5  ;;  %v1118_v29 = vld [vmem:[%s1449_s9 + $0xb0] ss:$8 sps:$4 sm:$0xff]   ;;  %v1119_v30 = vld [vmem:[%s1449_s9 + $0xc4] ss:$8 sps:$4 sm:$0xff]   ;;  %v1121_v31 = vld [vmem:[%s1449_s9 + $0xc0] ss:$8 sps:$4 sm:$0xff]  }
  0x64   : > { %493 = vmatprep.subr.bf16.mxu0 %v1092_v6  ;;  %990 = vmatprep.subr.bf16.mxu1 %v1092_v6  ;;  %v1122_v32 = vld [vmem:[%s1449_s9 + $0xd4] ss:$8 sps:$4 sm:$0xff]   ;;  %v1124_v33 = vld [vmem:[%s1449_s9 + $0xd0] ss:$8 sps:$4 sm:$0xff]   ;;  %v1125_v34 = vld [vmem:[%s1449_s9 + $0xe4] ss:$8 sps:$4 sm:$0xff]  }
  0x65   : > { %v1127_v35 = vld [vmem:[%s1449_s9 + $0xe0] ss:$8 sps:$4 sm:$0xff]   ;;  %v1128_v36 = vld [vmem:[%s1449_s9 + $0xf4] ss:$8 sps:$4 sm:$0xff]   ;;  %v1130_v37 = vld [vmem:[%s1449_s9 + $0xf0] ss:$8 sps:$4 sm:$0xff]  }
  0x66   : > { %v279_v40 = vld [vmem:[#allocation2 + $0x40] sm:$0xff]  ;;  %v281_v41 = vld [vmem:[#allocation2 + $0x50] sm:$0xff]  ;;  %v276_v42 = vld [vmem:[#allocation2 + $0x28] sm:$0xff]  ;;  %s1710_s26 = smov (!%p1578_p8, %s930_s26), 3  ;;  %s816_s5 = sshll.u32 %s1618_s13, 4  ;;  %s1622_s5 = int_to_ptr.vmem [resolvable:$true] %s816_s5 }
  0x67   : > { %494 = vmatpush1.bf16.msra.mxu0 %v1094_v7  ;;  %1006 = vmatpush1.bf16.msra.mxu1 %v1094_v7  ;;  %v278_v43 = vld [vmem:[#allocation2 + $0x38] sm:$0xff]  ;;  %v284_v44 = vld [vmem:[#allocation2 + $0x68] sm:$0xff]  ;;  %v291_v47 = vpack.c.bf16 %v281_v41, %v279_v40  ;;  %v275_v50 = vld [vmem:[#allocation2 + $0x20] sm:$0xff]  ;;  %s263_s25 = scalar_lea.vmem %s1681_s2, %s1710_s26  ;;  %s268_s7 = scalar_lea.vmem %s1682_s3, %s1710_s26 }
  0x68   : > { %495 = vmatprep.subr.bf16.mxu0 %v1095_v8  ;;  %991 = vmatprep.subr.bf16.mxu1 %v1095_v8  ;;  %v286_v45 = vld [vmem:[#allocation2 + $0x78] sm:$0xff]  ;;  %v290_v48 = vpack.c.bf16 %v278_v43, %v276_v42  ;;  %v277_v51 = vld [vmem:[#allocation2 + $0x30] sm:$0xff]  ;;  %v283_v52 = vld [vmem:[#allocation2 + $0x60] sm:$0xff]  ;;  %s803_s11 = scalar_lea.sflag [#allocation4], %s1445_s30  ;;  %s1193_s9 = scalar_lea.vmem %s1622_s5, 1024 }
  0x69   : > { %v294_v49 = vpack.c.bf16 %v286_v45, %v284_v44  ;;  %v285_v53 = vld [vmem:[#allocation2 + $0x70] sm:$0xff]  ;;  %v289_v54 = vpack.c.bf16 %v277_v51, %v275_v50  ;;  %p1194_p9 = scmp.ne.s32.totalorder %s1622_s5, %s1193_s9  ;;  %p1702_p10 = scmp.ne.s32.totalorder %s1690_s27, 0 }
  0x6a   : > { %v293_v55 = vpack.c.bf16 %v285_v53, %v283_v52  ;;  %s1271_s26 = smov [#allocation7]  }
  0x6b   : > { %496 = vmatpush1.bf16.msra.mxu0 %v1097_v9  ;;  %1007 = vmatpush1.bf16.msra.mxu1 %v1097_v9  ;;  %p1195_p1 = pnand %p1194_p9, %p1702_p10  ;;  %s1197_s29 = sshll.u32 %s1271_s26, 4  ;;  %s1198_s29 = int_to_ptr.vmem [resolvable:$false] %s1197_s29 }
  0x6c   : > { %497 = vmatprep.subr.bf16.mxu0 %v1098_v10  ;;  %992 = vmatprep.subr.bf16.mxu1 %v1098_v10  ;;  %s1199_s22 = scalar_lea.vmem %s1198_s29, 2048  ;;  %p1200_p0 = scmp.lt.s32.totalorder %s1622_s5, %s1198_s29 }
  0x6d   : > { %p1196_p4 = pneg %p1195_p1  ;;  %p1201_p5 = scmp.lt.s32.totalorder %s1199_s22, %s1193_s9 }
  0x6f   : > { %498 = vmatpush1.bf16.msra.mxu0 %v1100_v11  ;;  %1008 = vmatpush1.bf16.msra.mxu1 %v1100_v11  ;;  %p1202_p11 = por %p1201_p5, %p1200_p0 }
  0x70   : > { %499 = vmatprep.subr.bf16.mxu0 %v1101_v12  ;;  %993 = vmatprep.subr.bf16.mxu1 %v1101_v12 }
  0x71   : > { %p1203_p13 = pnand %p1202_p11, %p1196_p4 }
  0x73   : > { %500 = vmatpush1.bf16.msra.mxu0 %v1103_v17  ;;  %1009 = vmatpush1.bf16.msra.mxu1 %v1103_v17 }
  0x74   : > { %501 = vmatprep.subr.bf16.mxu0 %v1104_v19  ;;  %994 = vmatprep.subr.bf16.mxu1 %v1104_v19 }
  0x77   : > { %502 = vmatpush1.bf16.msra.mxu0 %v1106_v21  ;;  %1010 = vmatpush1.bf16.msra.mxu1 %v1106_v21 }
  0x78   : > { %503 = vmatprep.subr.bf16.mxu0 %v1107_v22  ;;  %995 = vmatprep.subr.bf16.mxu1 %v1107_v22 }
  0x7b   : > { %504 = vmatpush1.bf16.msra.mxu0 %v1109_v23  ;;  %1011 = vmatpush1.bf16.msra.mxu1 %v1109_v23 }
  0x7c   : > { %505 = vmatprep.subr.bf16.mxu0 %v1110_v24  ;;  %996 = vmatprep.subr.bf16.mxu1 %v1110_v24 }
  0x7f   : > { %506 = vmatpush1.bf16.msra.mxu0 %v1112_v25  ;;  %1012 = vmatpush1.bf16.msra.mxu1 %v1112_v25 }
  0x80   : > { %507 = vmatprep.subr.bf16.mxu0 %v1113_v26  ;;  %997 = vmatprep.subr.bf16.mxu1 %v1113_v26 }
  0x83   : > { %508 = vmatpush1.bf16.msra.mxu0 %v1115_v27  ;;  %1013 = vmatpush1.bf16.msra.mxu1 %v1115_v27 }
  0x84   : > { %509 = vmatprep.subr.bf16.mxu0 %v1116_v28  ;;  %998 = vmatprep.subr.bf16.mxu1 %v1116_v28 }
  0x87   : > { %510 = vmatpush1.bf16.msra.mxu0 %v1118_v29  ;;  %1014 = vmatpush1.bf16.msra.mxu1 %v1118_v29 }
  0x88   : > { %511 = vmatprep.subr.bf16.mxu0 %v1119_v30  ;;  %999 = vmatprep.subr.bf16.mxu1 %v1119_v30 }
  0x8b   : > { %512 = vmatpush1.bf16.msra.mxu0 %v1121_v31  ;;  %1015 = vmatpush1.bf16.msra.mxu1 %v1121_v31 }
  0x8c   : > { %513 = vmatprep.subr.bf16.mxu0 %v1122_v32  ;;  %1000 = vmatprep.subr.bf16.mxu1 %v1122_v32 }
  0x8f   : > { %514 = vmatpush1.bf16.msra.mxu0 %v1124_v33  ;;  %1016 = vmatpush1.bf16.msra.mxu1 %v1124_v33 }
  0x90   : > { %515 = vmatprep.subr.bf16.mxu0 %v1125_v34  ;;  %1001 = vmatprep.subr.bf16.mxu1 %v1125_v34 }
  0x93   : > { %516 = vmatpush1.bf16.msra.mxu0 %v1127_v35  ;;  %1017 = vmatpush1.bf16.msra.mxu1 %v1127_v35 }
  0x94   : > { %517 = vmatprep.subr.bf16.mxu0 %v1128_v36  ;;  %1002 = vmatprep.subr.bf16.mxu1 %v1128_v36 }
  0x97   : > { %518 = vmatpush1.bf16.msra.mxu0 %v1130_v37  ;;  %1018 = vmatpush1.bf16.msra.mxu1 %v1130_v37 }
  0x9a   : > { %520 = vmatmul.mubr.bf16.vlgmr.msra.gmra.mrb[0].mxu0 %v287_v46  ;;  %540 = vmatmul.mubr.bf16.vlgmr.msra.gmra.mrb[0].mxu1 %v291_v47 }
  0x9b   : > { %529 = vmatprep.mubr.bf16.mxu0 %v290_v48  ;;  %549 = vmatprep.mubr.bf16.mxu1 %v294_v49 }
  0xa2   : > { %530 = vmatmul.mubr.bf16.gmra.mrb[4].mxu0 %v289_v54  ;;  %550 = vmatmul.mubr.bf16.gmra.mrb[4].mxu1 %v293_v55 }
 0x16d   : > { %v1487_v56 = vpop.f32.mrb[0].mxu0  ;;  %v1489_v57 = vpop.f32.mrb[0].mxu1 }
 0x16e   : > { %v1491_v58 = vpop.f32.mrb[1].mxu0  ;;  %v1493_v59 = vpop.f32.mrb[1].mxu1  ;;  %v588_v62 = vmul.f32 %v1487_v56, %v1487_v56  ;;  %v596_v26 = vmul.f32 %v1489_v57, %v1489_v57 }
 0x16f   : > { %v1495_v60 = vpop.f32.mrb[2].mxu0  ;;  %v1497_v61 = vpop.f32.mrb[2].mxu1  ;;  %v589_v3 = vmul.f32 %v1491_v58, %v1491_v58  ;;  %v597_v29 = vmul.f32 %v1493_v59, %v1493_v59 }
 0x170   : > { %v560_v63 = vadd.f32 %v1495_v60, %v1487_v56  ;;  %v590_v0 = vmul.f32 %v1495_v60, %v1495_v60  ;;  %v1505_v1 = vpop.f32.mrb[3].mxu0  ;;  %v1507_v2 = vpop.f32.mrb[3].mxu1  ;;  %v598_v32 = vmul.f32 %v1497_v61, %v1497_v61 }
 0x171   : > { %v573_v4 = vadd.f32 %v1505_v1, %v1491_v58  ;;  %v591_v5 = vmul.f32 %v1505_v1, %v1505_v1  ;;  %v599_v36 = vmul.f32 %v1507_v2, %v1507_v2 }
 0x172   : > { %v604_v6 = vadd.f32 %v590_v0, %v588_v62 }
 0x173   : > { %v617_v7 = vadd.f32 %v591_v5, %v589_v3 }
 0x175   : > { %v1515_v8 = vpop.f32.mrb[4].mxu0  ;;  %v1517_v9 = vpop.f32.mrb[4].mxu1 }
 0x176   : > { %v561_v10 = vadd.f32 %v560_v63, %v1515_v8  ;;  %v592_v11 = vmul.f32 %v1515_v8, %v1515_v8  ;;  %v1522_v12 = vpop.f32.mrb[5].mxu0  ;;  %v1524_v13 = vpop.f32.mrb[5].mxu1  ;;  %v600_v35 = vmul.f32 %v1517_v9, %v1517_v9 }
 0x177   : > { %v574_v14 = vadd.f32 %v573_v4, %v1522_v12  ;;  %v593_v15 = vmul.f32 %v1522_v12, %v1522_v12  ;;  %v1529_v16 = vpop.f32.mrb[6].mxu0  ;;  %v1531_v17 = vpop.f32.mrb[6].mxu1  ;;  %v601_v39 = vmul.f32 %v1524_v13, %v1524_v13 }
 0x178   : > { %v605_v18 = vadd.f32 %v604_v6, %v592_v11  ;;  %v562_v19 = vadd.f32 %v561_v10, %v1529_v16  ;;  %v594_v20 = vmul.f32 %v1529_v16, %v1529_v16  ;;  %v1536_v21 = vpop.f32.mrb[7].mxu0  ;;  %v1538_v22 = vpop.f32.mrb[7].mxu1  ;;  %v602_v46 = vmul.f32 %v1531_v17, %v1531_v17 }
 0x179   : > { %v618_v23 = vadd.f32 %v617_v7, %v593_v15  ;;  %v575_v24 = vadd.f32 %v574_v14, %v1536_v21  ;;  %v595_v25 = vmul.f32 %v1536_v21, %v1536_v21  ;;  %v603_v49 = vmul.f32 %v1538_v22, %v1538_v22 }
 0x17a   : > { %v563_v27 = vadd.f32 %v562_v19, %v1489_v57  ;;  %v606_v28 = vadd.f32 %v605_v18, %v594_v20 }
 0x17b   : > { %v576_v30 = vadd.f32 %v575_v24, %v1493_v59  ;;  %v619_v31 = vadd.f32 %v618_v23, %v595_v25 }
 0x17c   : > { %v607_v33 = vadd.f32 %v606_v28, %v596_v26  ;;  %v564_v34 = vadd.f32 %v563_v27, %v1497_v61 }
 0x17d   : > { %v620_v37 = vadd.f32 %v619_v31, %v597_v29  ;;  %v577_v38 = vadd.f32 %v576_v30, %v1507_v2 }
 0x17e   : > { %v565_v40 = vadd.f32 %v564_v34, %v1517_v9  ;;  %v608_v41 = vadd.f32 %v607_v33, %v598_v32 }
 0x17f   : > { %v578_v42 = vadd.f32 %v577_v38, %v1524_v13  ;;  %v621_v43 = vadd.f32 %v620_v37, %v599_v36 }
 0x180   : > { %v609_v44 = vadd.f32 %v608_v41, %v600_v35  ;;  %v566_v45 = vadd.f32 %v565_v40, %v1531_v17 }
 0x181   : > { %v622_v47 = vadd.f32 %v621_v43, %v601_v39  ;;  %v579_v48 = vadd.f32 %v578_v42, %v1538_v22  ;;  %v676_v42 = vlaneseq }
 0x182   : > { %v567_v50 = vrot.slane %v566_v45, 4  ;;  %v610_v51 = vadd.f32 %v609_v44, %v602_v46 }
 0x183   : > { %v580_v52 = vrot.slane %v579_v48, 4  ;;  %v623_v53 = vadd.f32 %v622_v47, %v603_v49 }
 0x184   : > { %v568_v54 = vadd.f32 %v567_v50, %v566_v45  ;;  %v611_v55 = vrot.slane %v610_v51, 4 }
 0x185   : > { %v581_v62 = vadd.f32 %v580_v52, %v579_v48  ;;  %v624_v63 = vrot.slane %v623_v53, 4 }
 0x186   : > { %v569_v0 = vrot.slane %v568_v54, 2  ;;  %v612_v3 = vadd.f32 %v611_v55, %v610_v51 }
 0x187   : > { %v582_v4 = vrot.slane %v581_v62, 2  ;;  %v625_v5 = vadd.f32 %v624_v63, %v623_v53 }
 0x188   : > { %v570_v6 = vadd.f32 %v569_v0, %v568_v54  ;;  %v613_v7 = vrot.slane %v612_v3, 2 }
 0x189   : > { %v583_v10 = vadd.f32 %v582_v4, %v581_v62  ;;  %v626_v11 = vrot.slane %v625_v5, 2 }
 0x18a   : > { %v571_v14 = vrot.slane %v570_v6, 1  ;;  %v614_v15 = vadd.f32 %v613_v7, %v612_v3 }
 0x18b   : > { %v584_v18 = vrot.slane %v583_v10, 1  ;;  %v627_v19 = vadd.f32 %v626_v11, %v625_v5 }
 0x18c   : > { %v572_v20 = vadd.f32 %v571_v14, %v570_v6  ;;  %v615_v23 = vrot.slane %v614_v15, 1 }
 0x18d   : > { %v585_v24 = vadd.f32 %v584_v18, %v583_v10  ;;  %v628_v25 = vrot.slane %v627_v19, 1 }
 0x18e   : > { %v586_v26 = vmul.f32 0.015625, %v572_v20  ;;  %v616_v27 = vadd.f32 %v615_v23, %v614_v15 }
 0x18f   : > { %v1567_v28 = vmul.f32 0.015625, %v585_v24  ;;  %v629_v29 = vadd.f32 %v628_v25, %v627_v19 }
 0x190   : > { %v630_v30 = vmul.f32 0.015625, %v616_v27  ;;  %v632_v31 = vmul.f32 %v586_v26, %v586_v26  ;;  %v638_v32 = vsub.f32 %v1487_v56, %v586_v26  ;;  %v640_v33 = vsub.f32 %v1495_v60, %v586_v26 }
 0x191   : > { %v642_v34 = vsub.f32 %v1515_v8, %v586_v26  ;;  %v644_v35 = vsub.f32 %v1529_v16, %v586_v26  ;;  %v646_v36 = vsub.f32 %v1489_v57, %v586_v26  ;;  %v648_v37 = vsub.f32 %v1497_v61, %v586_v26 }
 0x192   : > { %v634_v38 = vsub.f32 %v630_v30, %v632_v31  ;;  %v650_v39 = vsub.f32 %v1517_v9, %v586_v26  ;;  %v652_v40 = vsub.f32 %v1531_v17, %v586_v26  ;;  %v631_v41 = vmul.f32 0.015625, %v629_v29 }
 0x193   : > { %v633_v56 = vmul.f32 %v1567_v28, %v1567_v28  ;;  %v639_v60 = vsub.f32 %v1491_v58, %v1567_v28  ;;  %v641_v57 = vsub.f32 %v1505_v1, %v1567_v28  ;;  %v643_v61 = vsub.f32 %v1522_v12, %v1567_v28 }
 0x194   : > { %v636_v8 = vmax.f32 %v634_v38, 0.0  ;;  %v645_v9 = vsub.f32 %v1536_v21, %v1567_v28  ;;  %v647_v16 = vsub.f32 %v1493_v59, %v1567_v28  ;;  %v649_v17 = vsub.f32 %v1507_v2, %v1567_v28  ;;  %v674_v2 = vld [vmem:[%s263_s25] sm:$0x3] }
 0x195   : > { %v635_v43 = vsub.f32 %v631_v41, %v633_v56  ;;  %v651_v44 = vsub.f32 %v1524_v13, %v1567_v28  ;;  %v653_v45 = vsub.f32 %v1538_v22, %v1567_v28  ;;  %v677_v21 = vshrl.u32 %v676_v42, 7  ;;  %v702_v22 = vld [vmem:[%s268_s7] sm:$0x3] }
 0x196   : > { %v654_v46 = vadd.f32 1e-05, %v636_v8 }
 0x197   : > { %v637_v47 = vmax.f32 %v635_v43, 0.0  ;;  %v678_v59 = vsub.s32 0, %v677_v21  ;;  %v682_v13 = vsub.s32 1, %v677_v21 }
 0x198   : > { %1131 = vrsqrt.f32 %v654_v46 }
 0x199   : > { %v655_v48 = vadd.f32 1e-05, %v637_v47  ;;  %v679_v49 = vrot.slane %v674_v2, %v678_v59  ;;  %v707_v51 = vrot.slane %v702_v22, %v678_v59  ;;  %v683_v52 = vrot.slane %v674_v2, %v682_v13 }
 0x19a   : > { %v711_v53 = vrot.slane %v702_v22, %v682_v13 }
 0x19b   : > { %1133 = vrsqrt.f32 %v655_v48 }
 0x1a2   : > { %v1132_v50 = vpop.eup %1131 }
 0x1a3   : > { %v658_v54 = vmul.f32 %v1132_v50, %v638_v32  ;;  %v660_v55 = vmul.f32 %v1132_v50, %v640_v33  ;;  %v662_v62 = vmul.f32 %v1132_v50, %v642_v34  ;;  %v664_v63 = vmul.f32 %v1132_v50, %v644_v35 }
 0x1a4   : > { %v666_v0 = vmul.f32 %v1132_v50, %v646_v36  ;;  %v668_v3 = vmul.f32 %v1132_v50, %v648_v37  ;;  %v670_v4 = vmul.f32 %v1132_v50, %v650_v39  ;;  %v672_v5 = vmul.f32 %v1132_v50, %v652_v40 }
 0x1a5   : > { %v686_v6 = vmul.f32 %v679_v49, %v658_v54  ;;  %v688_v7 = vmul.f32 %v679_v49, %v660_v55  ;;  %v690_v10 = vmul.f32 %v679_v49, %v662_v62  ;;  %v692_v11 = vmul.f32 %v679_v49, %v664_v63  ;;  %v1134_v26 = vpop.eup %1133 }
 0x1a6   : > { %v694_v14 = vmul.f32 %v679_v49, %v666_v0  ;;  %v696_v15 = vmul.f32 %v679_v49, %v668_v3  ;;  %v698_v18 = vmul.f32 %v679_v49, %v670_v4  ;;  %v700_v19 = vmul.f32 %v679_v49, %v672_v5 }
 0x1a7   : > { %v714_v20 = vadd.f32 %v707_v51, %v686_v6  ;;  %v716_v23 = vadd.f32 %v707_v51, %v688_v7  ;;  %v718_v24 = vadd.f32 %v707_v51, %v690_v10  ;;  %v720_v25 = vadd.f32 %v707_v51, %v692_v11 }
 0x1a8   : > { %v722_v27 = vadd.f32 %v707_v51, %v694_v14  ;;  %v724_v29 = vadd.f32 %v707_v51, %v696_v15  ;;  %v726_v30 = vadd.f32 %v707_v51, %v698_v18  ;;  %v728_v31 = vadd.f32 %v707_v51, %v700_v19 }
 0x1a9   : > { %v730_v32 = vmax.f32 %v714_v20, 0.0  ;;  %v732_v33 = vmax.f32 %v716_v23, 0.0  ;;  %v734_v34 = vmax.f32 %v718_v24, 0.0  ;;  %v736_v35 = vmax.f32 %v720_v25, 0.0 }
 0x1aa   : > { %v738_v36 = vmax.f32 %v722_v27, 0.0  ;;  %v740_v37 = vmax.f32 %v724_v29, 0.0  ;;  %v742_v38 = vmax.f32 %v726_v30, 0.0  ;;  %v744_v39 = vmax.f32 %v728_v31, 0.0 }
 0x1ab   : > { %v659_v40 = vmul.f32 %v1134_v26, %v639_v60  ;;  %v661_v41 = vmul.f32 %v1134_v26, %v641_v57  ;;  %v663_v56 = vmul.f32 %v1134_v26, %v643_v61  ;;  %v665_v8 = vmul.f32 %v1134_v26, %v645_v9 }
 0x1ac   : > { %v667_v42 = vmul.f32 %v1134_v26, %v647_v16  ;;  %v669_v43 = vmul.f32 %v1134_v26, %v649_v17  ;;  %v671_v46 = vmul.f32 %v1134_v26, %v651_v44  ;;  %v673_v47 = vmul.f32 %v1134_v26, %v653_v45 }
 0x1ad   : > { %v687_v21 = vmul.f32 %v683_v52, %v659_v40  ;;  %v689_v48 = vmul.f32 %v683_v52, %v661_v41  ;;  %v691_v59 = vmul.f32 %v683_v52, %v663_v56  ;;  %v693_v2 = vmul.f32 %v683_v52, %v665_v8 }
 0x1ae   : > { %v695_v58 = vmul.f32 %v683_v52, %v667_v42  ;;  %v697_v60 = vmul.f32 %v683_v52, %v669_v43  ;;  %v699_v13 = vmul.f32 %v683_v52, %v671_v46  ;;  %v701_v22 = vmul.f32 %v683_v52, %v673_v47 }
 0x1af   : > { %v715_v1 = vadd.f32 %v711_v53, %v687_v21  ;;  %v717_v57 = vadd.f32 %v711_v53, %v689_v48  ;;  %v719_v49 = vadd.f32 %v711_v53, %v691_v59  ;;  %v721_v50 = vadd.f32 %v711_v53, %v693_v2 }
 0x1b0   : > { %v723_v12 = vadd.f32 %v711_v53, %v695_v58  ;;  %v725_v28 = vadd.f32 %v711_v53, %v697_v60  ;;  %v727_v61 = vadd.f32 %v711_v53, %v699_v13  ;;  %v729_v9 = vadd.f32 %v711_v53, %v701_v22 }
 0x1b1   : > { %v731_v16 = vmax.f32 %v715_v1, 0.0  ;;  %v733_v17 = vmax.f32 %v717_v57, 0.0  ;;  %v735_v44 = vmax.f32 %v719_v49, 0.0  ;;  %v737_v45 = vmax.f32 %v721_v50, 0.0 }
 0x1b2   : > { %v739_v51 = vmax.f32 %v723_v12, 0.0  ;;  %v741_v52 = vmax.f32 %v725_v28, 0.0  ;;  %v743_v54 = vmax.f32 %v727_v61, 0.0  ;;  %v745_v55 = vmax.f32 %v729_v9, 0.0 }
 0x1b3   : > { %v978_v62 = vpack.c.bf16 %v731_v16, %v730_v32  ;;  %v979_v53 = vpack.c.bf16 %v733_v17, %v732_v33  ;;  %v980_v63 = vpack.c.bf16 %v735_v44, %v734_v34  ;;  %v981_v0 = vpack.c.bf16 %v737_v45, %v736_v35 }
 0x1b4   : > { %v982_v3 = vpack.c.bf16 %v739_v51, %v738_v36  ;;  %v983_v4 = vpack.c.bf16 %v741_v52, %v740_v37  ;;  %v984_v5 = vpack.c.bf16 %v743_v54, %v742_v38  ;;  %v985_v6 = vpack.c.bf16 %v745_v55, %v744_v39 }
 0x1b5   : > { %794 = vst [vmem:[%s1618_s13] sm:$0xff] %v978_v62  ;;  %795 = vst [vmem:[%s1618_s13 + $0x8] sm:$0xff] %v979_v53 }
 0x1b6   : > { %796 = vst [vmem:[%s1618_s13 + $0x10] sm:$0xff] %v980_v63  ;;  %797 = vst [vmem:[%s1618_s13 + $0x18] sm:$0xff] %v981_v0 }
 0x1b7   : > { %798 = vst [vmem:[%s1618_s13 + $0x20] sm:$0xff] %v982_v3  ;;  %799 = vst [vmem:[%s1618_s13 + $0x28] sm:$0xff] %v983_v4 }
 0x1b8   : > { %800 = vst [vmem:[%s1618_s13 + $0x30] sm:$0xff] %v984_v5  ;;  %801 = vst [vmem:[%s1618_s13 + $0x38] sm:$0xff] %v985_v6 }
 0x1b9   : > { %1206 = shalt.err (!%p1203_p13)
}
 0x1ba   : > { %s1207_s6 = scalar_lea.hbm %s1627_s8, 1024  ;;  %s1211_s12 = scalar_lea.hbm %s1683_s4, 2048 }
 0x1bb   : > { %p1208_p2 = scmp.ne.s32.totalorder %s1627_s8, %s1207_s6  ;;  %p1212_p7 = scmp.lt.u32.totalorder %s1627_s8, %s1683_s4 }
 0x1bc   : > { %p1213_p3 = scmp.lt.u32.totalorder %s1211_s12, %s1207_s6  ;;  %p1215_p9 = scmp.lt.u32.totalorder %s1207_s6, %s1627_s8 }
 0x1bd   : > { %p1209_p6 = pnand %p1208_p2, %p1702_p10 }
 0x1be   : > { %p1214_p8 = por %p1213_p3, %p1212_p7 }
 0x1bf   : > { %p1210_p12 = pneg %p1209_p6 }
 0x1c0   : > { %p1216_p1 = por %p1215_p9, %p1214_p8 }
 0x1c2   : > { %p1217_p4 = pnand %p1216_p1, %p1210_p12 }
 0x1c4   : > { %1220 = shalt.err (!%p1217_p4)
}
 0x1c5   : > { %s1272_s13 = smov 128   ;;  %s1273_s20 = smov 256  }
 0x1c6   : > { %s1274_s19 = smov 8  }
 0x1c7   : > { %1025 = dma.vmem_to_hbm [thread:$0]  (%p1702_p10), %s1622_s5, 1024, %s1627_s8, %s803_s11, %s1272_s13, %s1273_s20, %s1274_s19  }
 0x1c8 PF: > { %s831_s23 = sand.u32 1, %s1251_s15   ;;  %p1703_p0 = scmp.ne.s32.totalorder %s1691_s28, 0 }
 0x1c9   : > { %p1704_p5 = scmp.ge.s32.totalorder %s1263_s18, 2  ;;  %s832_s9 = scalar_lea.sflag [#allocation4], %s831_s23 }
 0x1cb   : > { %p1036_p11 = pnand %p1704_p5, %p1703_p0 }
 0x1cd   : > { %1246 = dma.done.wait (!%p1036_p11), %s832_s9, 1024  }
 0x1ce   : > { %1248 = vsyncadd (!%p1036_p11), %s832_s9, 4294966272  ;;  %p18_p13 = scmp.ge.s32.totalorder %s1325_s21, 4   ;;  %s1705_s15 = smov %s1255_s16 }
 0x1cf   : > { %s1706_s16 = smov %s1259_s17  ;;  %s1707_s17 = smov %s1337_s24 }
 0x1d0   : > { %s1708_s18 = smov %s1325_s21  ;;  %20 = sbr.rel (!%p18_p13) target bundleno = 6 (0x6), region = 92 }
 0x1d7   :  { %837 = vsyncpa [#allocation3], 1 }
 0x1d8   :  { %839 = vsyncpa [#allocation3 + $0x1], 1 }
 0x1d9   :  { %840 = vsyncpa [#allocation6], 1 }
 0x1da   :  { %842 = vsyncpa [#allocation6 + $0x1], 1 }
 0x1db   :  { %843 = vsyncpa [#allocation4], 1 }
 0x1dc   :  { %845 = vsyncpa [#allocation4 + $0x1], 1 }

</bundles_post_ra>
